<compile_context>
chip_gen: v7x
topology: tpu7x:2x2x1
jax: 0.10.0
libtpu: 0.0.40
codegen_flags: <defaults>
</compile_context>

<pallas_src>
import functools

import jax
import jax.numpy as jnp
from jax.experimental import pallas as pl
from jax.experimental.pallas import tpu as pltpu

BN_EPS = 1e-5
IN_FEAT = 27    # kernel_size^2 * 3
HIDDEN = 64
OUT_FEAT = 9


# -----------------------------------------------------------------------------
# Pallas kernel: Linear(27->64) + BatchNorm1d(64, train-mode stats) + ReLU
#                + Linear(64->9), fully fused, feature-major layout.
# The whole problem is resident in VMEM (R = N*L = 512 rows) because BN needs
# global statistics over all rows; no grid is used.
# -----------------------------------------------------------------------------
def depth_transform_kernel(xT_ref, p1_ref, p2_ref, out_ref):
    """xT_ref : (27, R)   feature-major im2col columns, R = N*L on lanes
       p1_ref : (64, 29)  [ w1^T (64,27) | gamma (64,1) | beta (64,1) ]
       p2_ref : (9, 65)   [ w2^T (9,64)  | b2 (9,1) ]
       out_ref: (9, R)    lane-dense output (y^T)
    """
    xT = xT_ref[...]                                              # (27, R)
    p1 = p1_ref[...]
    w1T = p1[:, 0:IN_FEAT]                                        # (64, 27)
    gamma = p1[:, IN_FEAT:IN_FEAT + 1]                            # (64, 1)
    beta = p1[:, IN_FEAT + 1:IN_FEAT + 2]                         # (64, 1)

    # Linear 1 on the MXU. The torch bias b1 is omitted: train-mode BatchNorm
    # subtracts the batch mean, which cancels any per-feature constant exactly.
    h = jnp.dot(w1T, xT, preferred_element_type=jnp.float32)      # (64, R)

    # BatchNorm1d (training mode): biased stats over all rows (= over N and L).
    # Lane-axis reductions; affine folded into one multiply + one add.
    mean = jnp.mean(h, axis=1, keepdims=True)                     # (64, 1)
    hc = h - mean
    var = jnp.mean(hc * hc, axis=1, keepdims=True)                # (64, 1)
    scale = gamma * jax.lax.rsqrt(var + BN_EPS)                   # (64, 1)
    h = jnp.maximum(hc * scale + beta, 0.0)                       # BN affine + ReLU

    p2 = p2_ref[...]
    w2T = p2[:, 0:HIDDEN]                                         # (9, 64)
    b2 = p2[:, HIDDEN:HIDDEN + 1]                                 # (9, 1)
    out_ref[...] = jnp.dot(w2T, h, preferred_element_type=jnp.float32) + b2


# -----------------------------------------------------------------------------
# Glue: feature-major im2col (nn.Unfold semantics, zero padding), params.
# im2col stays on the XLA side because collapsing (N, oh, ow) -> (N*L,) inside
# the kernel requires a lane-crossing reshape of a 16-wide minor dim; building
# it feature-major here avoids any lane-hostile transpose.
# -----------------------------------------------------------------------------
def _unfold_feature_major(x, k, stride, padding, dilation):
    """(N,C,H,W) -> (C*k*k, N*L) with torch nn.Unfold feature ordering (c,ki,kj)
    and torch row ordering (n outer, then oh, ow row-major)."""
    N, C, H, W = x.shape
    xp = jnp.pad(x, ((0, 0), (0, 0), (padding, padding), (padding, padding)))
    out_h = (H + 2 * padding - dilation * (k - 1) - 1) // stride + 1
    out_w = (W + 2 * padding - dilation * (k - 1) - 1) // stride + 1
    feats = []
    for c in range(C):
        for i in range(k):
            for j in range(k):
                hi = i * dilation
                wj = j * dilation
                patch = xp[:, c,
                           hi: hi + stride * (out_h - 1) + 1: stride,
                           wj: wj + stride * (out_w - 1) + 1: stride]  # (N,oh,ow)
                feats.append(patch)
    xT = jnp.stack(feats, axis=0).reshape(C * k * k, N * out_h * out_w)
    return xT, out_h, out_w


def init_params(key, kernel_size=3):
    """Deterministic synthetic parameters (same shapes as the torch module)."""
    in_feat = kernel_size * kernel_size * 3
    k1, k2, k3, k4 = jax.random.split(key, 4)
    scale1 = 1.0 / jnp.sqrt(jnp.float32(in_feat))
    scale2 = 1.0 / jnp.sqrt(jnp.float32(HIDDEN))
    return {
        "w1": jax.random.uniform(k1, (in_feat, HIDDEN), jnp.float32, -scale1, scale1),
        # b1 exists in the torch module but is mathematically cancelled by the
        # train-mode BatchNorm mean subtraction, so it is never sent to the kernel.
        "b1": jax.random.uniform(k2, (1, HIDDEN), jnp.float32, -scale1, scale1),
        "gamma": jnp.ones((1, HIDDEN), jnp.float32),   # BatchNorm1d default init
        "beta": jnp.zeros((1, HIDDEN), jnp.float32),
        "w2": jax.random.uniform(k3, (HIDDEN, OUT_FEAT), jnp.float32, -scale2, scale2),
        "b2": jax.random.uniform(k4, (1, OUT_FEAT), jnp.float32, -scale2, scale2),
    }


def depth_transform_forward(x, params, kernel_size=3, stride=1, padding=1,
                            dilation=1):
    """x: (N, 3, H, W) float32 -> (N, 9, L) float32 (matches torch output)."""
    N, C, H, W = x.shape
    xT, out_h, out_w = _unfold_feature_major(x, kernel_size, stride, padding,
                                             dilation)
    L = out_h * out_w
    R = N * L

    # Pack the small parameters into two slabs -> 3 input DMAs total.
    p1 = jnp.concatenate(
        [params["w1"].T,                                   # (64, 27)
         params["gamma"].reshape(HIDDEN, 1),               # (64, 1)
         params["beta"].reshape(HIDDEN, 1)], axis=1)       # -> (64, 29)
    p2 = jnp.concatenate(
        [params["w2"].T,                                   # (9, 64)
         params["b2"].reshape(OUT_FEAT, 1)], axis=1)       # -> (9, 65)

    vmem = pl.BlockSpec(memory_space=pltpu.MemorySpace.VMEM)
    yT = pl.pallas_call(
        depth_transform_kernel,
        out_shape=jax.ShapeDtypeStruct((OUT_FEAT, R), jnp.float32),
        in_specs=[vmem, vmem, vmem],
        out_specs=vmem,
    )(xT.astype(jnp.float32), p1, p2)

    # (9, N*L) -> (9, N, L) -> (N, 9, L)   (tiny, ~18 KB)
    return yT.reshape(OUT_FEAT, N, L).transpose(1, 0, 2)


if __name__ == "__main__":
    key = jax.random.PRNGKey(0)
    kx, kp = jax.random.split(key)

    # in_channel must be 3 (l1 input dim is kernel_size*kernel_size*3)
    N, C, H, W = 2, 3, 16, 16
    kernel_size, stride, padding, dilation = 3, 1, 1, 1

    x = jax.random.normal(kx, (N, C, H, W), dtype=jnp.float32)
    params = init_params(kp, kernel_size)

    fwd = jax.jit(functools.partial(depth_transform_forward,
                                    kernel_size=kernel_size, stride=stride,
                                    padding=padding, dilation=dilation))
    out = jax.block_until_ready(fwd(x, params))

    # Expected output shape: (N, 9, out_h*out_w) = (2, 9, 256)
    assert out.shape == (N, 9, H * W), out.shape
    assert bool(jnp.all(jnp.isfinite(out)))
    print("KERNEL_OK")
</pallas_src>

<mosaic_0001>
module attributes {stable_mosaic.version = 11 : i64} {
  func.func @depth_transform_kernel(%arg0: memref<27x512xf32, #tpu.memory_space<vmem>>, %arg1: memref<64x29xf32, #tpu.memory_space<vmem>>, %arg2: memref<9x65xf32, #tpu.memory_space<vmem>>, %arg3: memref<9x512xf32, #tpu.memory_space<vmem>>) attributes {dimension_semantics = [], scalar_prefetch = 0 : i64, scratch_operands = 0 : i64, tpu.core_type = #tpu.core_type<tc>} {
    %c0 = arith.constant 0 : index
    %c0_0 = arith.constant 0 : index
    %0 = vector.load %arg0[%c0, %c0_0] : memref<27x512xf32, #tpu.memory_space<vmem>>, vector<27x512xf32>
    %c0_1 = arith.constant 0 : index
    %c0_2 = arith.constant 0 : index
    %1 = vector.load %arg1[%c0_1, %c0_2] : memref<64x29xf32, #tpu.memory_space<vmem>>, vector<64x29xf32>
    %2 = vector.extract_strided_slice %1 {offsets = [0, 0], sizes = [64, 27], strides = [1, 1]} : vector<64x29xf32> to vector<64x27xf32>
    %3 = vector.extract_strided_slice %1 {offsets = [0, 27], sizes = [64, 1], strides = [1, 1]} : vector<64x29xf32> to vector<64x1xf32>
    %4 = vector.extract_strided_slice %1 {offsets = [0, 28], sizes = [64, 1], strides = [1, 1]} : vector<64x29xf32> to vector<64x1xf32>
    %cst = arith.constant dense<0.000000e+00> : vector<64x512xf32>
    %5 = tpu.matmul %2, %0, %cst {dimension_numbers = #tpu.dot_dimension_numbers<[1], [0], [0], [1], [0, 0, 1, 1], [], []>} : vector<64x27xf32>, vector<27x512xf32>, vector<64x512xf32> -> vector<64x512xf32>
    %cst_3 = arith.constant dense<0.000000e+00> : vector<64xf32>
    %6 = vector.multi_reduction <add>, %5, %cst_3 [1] : vector<64x512xf32> to vector<64xf32>
    %7 = vector.shape_cast %6 : vector<64xf32> to vector<64x1xf32>
    %cst_4 = arith.constant 5.120000e+02 : f32
    %8 = vector.broadcast %cst_4 : f32 to vector<64x1xf32>
    %9 = arith.divf %7, %8 : vector<64x1xf32>
    %10 = vector.broadcast %9 : vector<64x1xf32> to vector<64x512xf32>
    %11 = arith.subf %5, %10 : vector<64x512xf32>
    %12 = arith.mulf %11, %11 : vector<64x512xf32>
    %cst_5 = arith.constant dense<0.000000e+00> : vector<64xf32>
    %13 = vector.multi_reduction <add>, %12, %cst_5 [1] : vector<64x512xf32> to vector<64xf32>
    %14 = vector.shape_cast %13 : vector<64xf32> to vector<64x1xf32>
    %cst_6 = arith.constant 5.120000e+02 : f32
    %15 = vector.broadcast %cst_6 : f32 to vector<64x1xf32>
    %16 = arith.divf %14, %15 : vector<64x1xf32>
    %cst_7 = arith.constant 9.99999974E-6 : f32
    %17 = vector.broadcast %cst_7 : f32 to vector<64x1xf32>
    %18 = arith.addf %16, %17 : vector<64x1xf32>
    %19 = math.rsqrt %18 : vector<64x1xf32>
    %20 = arith.mulf %3, %19 : vector<64x1xf32>
    %21 = vector.broadcast %20 : vector<64x1xf32> to vector<64x512xf32>
    %22 = arith.mulf %11, %21 : vector<64x512xf32>
    %23 = vector.broadcast %4 : vector<64x1xf32> to vector<64x512xf32>
    %24 = arith.addf %22, %23 : vector<64x512xf32>
    %cst_8 = arith.constant 0.000000e+00 : f32
    %25 = vector.broadcast %cst_8 : f32 to vector<64x512xf32>
    %26 = arith.maximumf %24, %25 : vector<64x512xf32>
    %c0_9 = arith.constant 0 : index
    %c0_10 = arith.constant 0 : index
    %27 = vector.load %arg2[%c0_9, %c0_10] : memref<9x65xf32, #tpu.memory_space<vmem>>, vector<9x65xf32>
    %28 = vector.extract_strided_slice %27 {offsets = [0, 0], sizes = [9, 64], strides = [1, 1]} : vector<9x65xf32> to vector<9x64xf32>
    %29 = vector.extract_strided_slice %27 {offsets = [0, 64], sizes = [9, 1], strides = [1, 1]} : vector<9x65xf32> to vector<9x1xf32>
    %cst_11 = arith.constant dense<0.000000e+00> : vector<9x512xf32>
    %30 = tpu.matmul %28, %26, %cst_11 {dimension_numbers = #tpu.dot_dimension_numbers<[1], [0], [0], [1], [0, 0, 1, 1], [], []>} : vector<9x64xf32>, vector<64x512xf32>, vector<9x512xf32> -> vector<9x512xf32>
    %31 = vector.broadcast %29 : vector<9x1xf32> to vector<9x512xf32>
    %32 = arith.addf %30, %31 : vector<9x512xf32>
    %c0_12 = arith.constant 0 : index
    %c0_13 = arith.constant 0 : index
    %33 = vector.load %arg3[%c0_12, %c0_13] : memref<9x512xf32, #tpu.memory_space<vmem>>, vector<9x512xf32>
    tpu.vector_store %arg3[%c0_12, %c0_13], %32 {strides = array<i32>} : memref<9x512xf32, #tpu.memory_space<vmem>>, vector<9x512xf32>,
    return
  }
}

</mosaic_0001>

<bundles_post_ra>
// kernel: depth_transform_forward.1
= control target key start
LH: loop header
LB: loop body
LE: loop exit
PB: predicated region body
PF: predicated region fallthrough
CT: control target
= control target key end

     0   :  { %vm63_vm0 = vcmask 1042432   ;;  %v944_v3 = vmov 0.0   ;;  %vm945_vm1 = vmmov 1   ;;  %vm38_vm3 = vcmask 220160   ;;  %s1476_s0 = inlined_call_operand.vmem [shape: f32[27,512], index: 0, kind: input, shape index: {}]   ;;  %s1477_s1 = inlined_call_operand.vmem [shape: f32[64,29], index: 1, kind: input, shape index: {}]   ;;  %s1478_s2 = inlined_call_operand.vmem [shape: f32[9,65], index: 2, kind: input, shape index: {}]   ;;  %s1479_s3 = inlined_call_operand.vmem [shape: f32[9,512], index: 3, kind: output, shape index: {}]  }
   0x1   :  { %v15_v0 = vld [vmem:[%s1476_s0 + $0x8] sm:$0xff]  ;;  %v14_v2 = vld [vmem:[%s1476_s0] sm:$0xff]  ;;  %140 = vmatprep.mubr.f32.mxu0 %v944_v3  ;;  %253 = vmatprep.mubr.f32.mxu1 %v944_v3  ;;  %v17_v6 = vld [vmem:[%s1476_s0 + $0x18] sm:$0xff]  ;;  %vm667_vm4 = vcmask 523264  }
   0x2   :  { %v19_v1 = vld [vmem:[%s1476_s0 + $0x28] sm:$0xff]  ;;  %v18_v5 = vld [vmem:[%s1476_s0 + $0x20] sm:$0xff]  ;;  %v21_v7 = vld [vmem:[%s1476_s0 + $0x38] sm:$0xff] }
   0x3   :  { %v862_v4 = vpack.c.bf16 %v19_v1, %v15_v0  ;;  %v864_v8 = vpack.c.bf16 %v18_v5, %v14_v2  ;;  %v872_v9 = vpack.c.bf16 %v21_v7, %v17_v6  ;;  %v16_v10 = vld [vmem:[%s1476_s0 + $0x10] sm:$0xff]  ;;  %v23_v12 = vld [vmem:[%s1476_s0 + $0x48] sm:$0xff]  ;;  %vm1002_vm2 = vmpackc.low %vm63_vm0, %vm945_vm1 }
   0x4   :  { %v20_v11 = vld [vmem:[%s1476_s0 + $0x30] sm:$0xff]  ;;  %v27_v14 = vld [vmem:[%s1476_s0 + $0x68] sm:$0x7]  ;;  %v22_v16 = vld [vmem:[%s1476_s0 + $0x40] sm:$0xff] }
   0x5   :  { %863 = vmatprep.subr.bf16.mxu0 %v862_v4  ;;  %v874_v13 = vpack.c.bf16 %v20_v11, %v16_v10  ;;  %873 = vmatprep.subr.bf16.mxu1 %v872_v9  ;;  %v866_v17 = vpack.c.bf16 %v27_v14, %v23_v12  ;;  %v26_v18 = vld [vmem:[%s1476_s0 + $0x60] sm:$0x7]  ;;  %v25_v19 = vld [vmem:[%s1476_s0 + $0x58] sm:$0xff]  ;;  %v24_v23 = vld [vmem:[%s1476_s0 + $0x50] sm:$0xff] }
   0x6   :  { %865 = vmatpush1.bf16.msra.mxu0 %v864_v8  ;;  %v29_v20 = vld [vmem:[%s1476_s0 + $0x78] sm:$0x7]  ;;  %v869_v21 = vpack.c.bf16 %v26_v18, %v22_v16  ;;  %v28_v24 = vld [vmem:[%s1476_s0 + $0x70] sm:$0x7]  ;;  %v1033_v26 = vld [vmem:[%s1477_s1] sm:$0xff] }
   0x7   :  { %875 = vmatpush1.bf16.msra.mxu1 %v874_v13  ;;  %v876_v22 = vpack.c.bf16 %v29_v20, %v25_v19  ;;  %868 = vmatprep.subr.msk.bf16.mxu0 %vm1002_vm2, %v866_v17  ;;  %v879_v25 = vpack.c.bf16 %v28_v24, %v24_v23  ;;  %v1045_v27 = vld [vmem:[%s1477_s1 + $0x8] sm:$0xff]  ;;  %v1056_v28 = vld [vmem:[%s1477_s1 + $0x10] sm:$0xff]  ;;  %v1067_v29 = vld [vmem:[%s1477_s1 + $0x18] sm:$0xff] }
   0x8   :  { %v1078_v30 = vld [vmem:[%s1477_s1 + $0x20] sm:$0xff]  ;;  %v1089_v31 = vld [vmem:[%s1477_s1 + $0x28] sm:$0xff]  ;;  %v1100_v32 = vld [vmem:[%s1477_s1 + $0x30] sm:$0xff] }
   0x9   :  { %878 = vmatprep.subr.msk.bf16.mxu1 %vm1002_vm2, %v876_v22  ;;  %v1111_v33 = vld [vmem:[%s1477_s1 + $0x38] sm:$0xff] }
   0xa   :  { %871 = vmatpush1.bf16.msk.msra.mxu0 %vm1002_vm2, %v869_v21 }
   0xb   :  { %881 = vmatpush1.bf16.msk.msra.mxu1 %vm1002_vm2, %v879_v25 }
   0xd   :  { %840 = vmatmul.mubr.msk.f32.vlgmr.msra.gmra.mrb[0].mxu0 %vm38_vm3, %v1033_v26 }
   0xe   :  { %850 = vmatmul.mubr.msk.f32.vlgmr.msra.gmra.mrb[0].mxu1 %vm38_vm3, %v1033_v26  ;;  %146 = vmatprep.mubr.f32.mxu0 %v944_v3 }
   0xf   :  { %259 = vmatprep.mubr.f32.mxu1 %v944_v3 }
  0x11   :  { %841 = vmatmul.mubr.msk.f32.gmra.mrb[2].mxu0 %vm38_vm3, %v1045_v27 }
  0x12   :  { %851 = vmatmul.mubr.msk.f32.gmra.mrb[2].mxu1 %vm38_vm3, %v1045_v27  ;;  %152 = vmatprep.mubr.f32.mxu0 %v944_v3 }
  0x13   :  { %265 = vmatprep.mubr.f32.mxu1 %v944_v3 }
  0x15   :  { %842 = vmatmul.mubr.msk.f32.gmra.mrb[4].mxu0 %vm38_vm3, %v1056_v28 }
  0x16   :  { %852 = vmatmul.mubr.msk.f32.gmra.mrb[4].mxu1 %vm38_vm3, %v1056_v28  ;;  %158 = vmatprep.mubr.f32.mxu0 %v944_v3 }
  0x17   :  { %271 = vmatprep.mubr.f32.mxu1 %v944_v3 }
  0x19   :  { %843 = vmatmul.mubr.msk.f32.gmra.mrb[6].mxu0 %vm38_vm3, %v1067_v29 }
  0x1a   :  { %853 = vmatmul.mubr.msk.f32.gmra.mrb[6].mxu1 %vm38_vm3, %v1067_v29  ;;  %164 = vmatprep.mubr.f32.mxu0 %v944_v3 }
  0x1b   :  { %277 = vmatprep.mubr.f32.mxu1 %v944_v3 }
  0x1d   :  { %844 = vmatmul.mubr.msk.f32.gmra.mrb[8].mxu0 %vm38_vm3, %v1078_v30 }
  0x1e   :  { %854 = vmatmul.mubr.msk.f32.gmra.mrb[8].mxu1 %vm38_vm3, %v1078_v30  ;;  %170 = vmatprep.mubr.f32.mxu0 %v944_v3 }
  0x1f   :  { %283 = vmatprep.mubr.f32.mxu1 %v944_v3 }
  0x21   :  { %845 = vmatmul.mubr.msk.f32.gmra.mrb[10].mxu0 %vm38_vm3, %v1089_v31 }
  0x22   :  { %855 = vmatmul.mubr.msk.f32.gmra.mrb[10].mxu1 %vm38_vm3, %v1089_v31  ;;  %176 = vmatprep.mubr.f32.mxu0 %v944_v3 }
  0x23   :  { %289 = vmatprep.mubr.f32.mxu1 %v944_v3 }
  0x25   :  { %846 = vmatmul.mubr.msk.f32.gmra.mrb[12].mxu0 %vm38_vm3, %v1100_v32 }
  0x26   :  { %856 = vmatmul.mubr.msk.f32.gmra.mrb[12].mxu1 %vm38_vm3, %v1100_v32  ;;  %182 = vmatprep.mubr.f32.mxu0 %v944_v3 }
  0x27   :  { %295 = vmatprep.mubr.f32.mxu1 %v944_v3 }
  0x29   :  { %847 = vmatmul.mubr.msk.f32.gmra.mrb[14].mxu0 %vm38_vm3, %v1111_v33 }
  0x2a   :  { %857 = vmatmul.mubr.msk.f32.gmra.mrb[14].mxu1 %vm38_vm3, %v1111_v33  ;;  %736 = vmatprep.mubr.f32.mxu0 %v944_v3 }
  0x2b   :  { %813 = vmatprep.mubr.f32.mxu1 %v944_v3 }
  0xe0   :  { %v1120_v34 = vpop.f32.mrb[0].mxu0 }
  0xe1   :  { %v1122_v35 = vpop.f32.mrb[1].mxu0  ;;  %v1124_v36 = vpop.f32.mrb[0].mxu1 }
  0xe2   :  { %v302_v37 = vadd.f32 %v1122_v35, %v1120_v34  ;;  %v1128_v38 = vpop.f32.mrb[1].mxu1 }
  0xe4   :  { %v303_v39 = vadd.f32 %v302_v37, %v1124_v36  ;;  %v1131_v40 = vpop.f32.mrb[2].mxu0 }
  0xe5   :  { %v1133_v41 = vpop.f32.mrb[3].mxu0  ;;  %v1135_v42 = vpop.f32.mrb[2].mxu1 }
  0xe6   :  { %v307_v43 = vadd.f32 %v1133_v41, %v1131_v40  ;;  %v1139_v44 = vpop.f32.mrb[3].mxu1  ;;  %v304_v45 = vadd.f32 %v303_v39, %v1128_v38  ;;  %v946_v39 = vmov 28  }
  0xe7   :  { %919 = vset.pattern.permute.xlu1 %v946_v39 }
  0xe8   :  { %v308_v46 = vadd.f32 %v307_v43, %v1135_v42  ;;  %305 = vadd.xlane.f32.xlu0 %v304_v45  ;;  %v1143_v47 = vpop.f32.mrb[4].mxu0 }
  0xe9   :  { %v1145_v48 = vpop.f32.mrb[5].mxu0  ;;  %v1147_v49 = vpop.f32.mrb[4].mxu1 }
  0xea   :  { %v312_v50 = vadd.f32 %v1145_v48, %v1143_v47  ;;  %v1151_v51 = vpop.f32.mrb[5].mxu1  ;;  %v309_v52 = vadd.f32 %v308_v46, %v1139_v44 }
  0xec   :  { %v313_v53 = vadd.f32 %v312_v50, %v1147_v49  ;;  %310 = vadd.xlane.f32.xlu0 %v309_v52  ;;  %v1155_v54 = vpop.f32.mrb[6].mxu0 }
  0xed   :  { %v1157_v55 = vpop.f32.mrb[7].mxu0  ;;  %v1159_v56 = vpop.f32.mrb[6].mxu1 }
  0xee   :  { %v317_v57 = vadd.f32 %v1157_v55, %v1155_v54  ;;  %v1163_v58 = vpop.f32.mrb[7].mxu1  ;;  %v314_v59 = vadd.f32 %v313_v53, %v1151_v51 }
  0xf0   :  { %v318_v60 = vadd.f32 %v317_v57, %v1159_v56  ;;  %315 = vadd.xlane.f32.xlu1 %v314_v59  ;;  %v1167_v61 = vpop.f32.mrb[8].mxu0 }
  0xf1   :  { %v1169_v62 = vpop.f32.mrb[9].mxu0  ;;  %v1171_v63 = vpop.f32.mrb[8].mxu1 }
  0xf2   :  { %v322_v0 = vadd.f32 %v1169_v62, %v1167_v61  ;;  %v1175_v1 = vpop.f32.mrb[9].mxu1  ;;  %v319_v2 = vadd.f32 %v318_v60, %v1163_v58 }
  0xf4   :  { %v323_v4 = vadd.f32 %v322_v0, %v1171_v63  ;;  %320 = vadd.xlane.f32.xlu1 %v319_v2  ;;  %v1179_v5 = vpop.f32.mrb[10].mxu0 }
  0xf5   :  { %v1181_v6 = vpop.f32.mrb[11].mxu0  ;;  %v1183_v7 = vpop.f32.mrb[10].mxu1 }
  0xf6   :  { %v327_v8 = vadd.f32 %v1181_v6, %v1179_v5  ;;  %v1187_v9 = vpop.f32.mrb[11].mxu1  ;;  %v324_v10 = vadd.f32 %v323_v4, %v1175_v1 }
  0xf8   :  { %v328_v11 = vadd.f32 %v327_v8, %v1183_v7  ;;  %325 = vadd.xlane.f32.xlu0 %v324_v10  ;;  %v1191_v12 = vpop.f32.mrb[12].mxu0 }
  0xf9   :  { %v1193_v13 = vpop.f32.mrb[13].mxu0  ;;  %v1195_v14 = vpop.f32.mrb[12].mxu1 }
  0xfa   :  { %v332_v15 = vadd.f32 %v1193_v13, %v1191_v12  ;;  %v1199_v16 = vpop.f32.mrb[13].mxu1  ;;  %v329_v17 = vadd.f32 %v328_v11, %v1187_v9 }
  0xfc   :  { %v333_v18 = vadd.f32 %v332_v15, %v1195_v14  ;;  %330 = vadd.xlane.f32.xlu1 %v329_v17  ;;  %v1203_v19 = vpop.f32.mrb[14].mxu0 }
  0xfd   :  { %v1205_v20 = vpop.f32.mrb[15].mxu0  ;;  %v1207_v21 = vpop.f32.mrb[14].mxu1 }
  0xfe   :  { %v337_v22 = vadd.f32 %v1205_v20, %v1203_v19  ;;  %v1211_v23 = vpop.f32.mrb[15].mxu1  ;;  %v334_v24 = vadd.f32 %v333_v18, %v1199_v16 }
 0x100   :  { %v338_v25 = vadd.f32 %v337_v22, %v1207_v21  ;;  %335 = vadd.xlane.f32.xlu0 %v334_v24 }
 0x102   :  { %v339_v37 = vadd.f32 %v338_v25, %v1211_v23 }
 0x104   :  { %340 = vadd.xlane.f32.xlu1 %v339_v37 }
 0x175   :  { %v306_v43 = vpop.xlane.xlu0 %305 }
 0x176   :  { %v343_v45 = vmul.f32 0.001953125, %v306_v43 }
 0x178   :  { %v1218_v46 = vsub.f32 %v1120_v34, %v343_v45  ;;  %v1221_v50 = vsub.f32 %v1122_v35, %v343_v45  ;;  %v1224_v52 = vsub.f32 %v1124_v36, %v343_v45  ;;  %v1227_v57 = vsub.f32 %v1128_v38, %v343_v45 }
 0x179   :  { %v311_v53 = vpop.xlane.xlu0 %310 }
 0x17a   :  { %v344_v59 = vmul.f32 0.001953125, %v311_v53  ;;  %v383_v60 = vmul.f32 %v1218_v46, %v1218_v46  ;;  %v384_v0 = vmul.f32 %v1221_v50, %v1221_v50  ;;  %v385_v34 = vmul.f32 %v1224_v52, %v1224_v52 }
 0x17b   :  { %v386_v8 = vmul.f32 %v1227_v57, %v1227_v57 }
 0x17c   :  { %v1236_v35 = vsub.f32 %v1131_v40, %v344_v59  ;;  %v1239_v36 = vsub.f32 %v1133_v41, %v344_v59  ;;  %v415_v2 = vadd.f32 %v384_v0, %v383_v60  ;;  %v1242_v38 = vsub.f32 %v1135_v42, %v344_v59 }
 0x17d   :  { %v316_v4 = vpop.xlane.xlu1 %315  ;;  %v1247_v10 = vsub.f32 %v1139_v44, %v344_v59 }
 0x17e   :  { %v345_v11 = vmul.f32 0.001953125, %v316_v4  ;;  %v416_v15 = vadd.f32 %v415_v2, %v385_v34  ;;  %v387_v40 = vmul.f32 %v1236_v35, %v1236_v35  ;;  %v388_v41 = vmul.f32 %v1239_v36, %v1239_v36 }
 0x17f   :  { %v389_v17 = vmul.f32 %v1242_v38, %v1242_v38  ;;  %v390_v25 = vmul.f32 %v1247_v10, %v1247_v10 }
 0x180   :  { %v1256_v42 = vsub.f32 %v1143_v47, %v345_v11  ;;  %v1259_v18 = vsub.f32 %v1145_v48, %v345_v11  ;;  %v417_v22 = vadd.f32 %v416_v15, %v386_v8  ;;  %v420_v44 = vadd.f32 %v388_v41, %v387_v40 }
 0x181   :  { %v321_v24 = vpop.xlane.xlu1 %320  ;;  %v1264_v37 = vsub.f32 %v1147_v49, %v345_v11  ;;  %v1267_v43 = vsub.f32 %v1151_v51, %v345_v11 }
 0x182   :  { %v346_v45 = vmul.f32 0.001953125, %v321_v24  ;;  %418 = vadd.xlane.f32.xlu0 %v417_v22  ;;  %v421_v53 = vadd.f32 %v420_v44, %v389_v17  ;;  %v391_v47 = vmul.f32 %v1256_v42, %v1256_v42  ;;  %v392_v48 = vmul.f32 %v1259_v18, %v1259_v18 }
 0x183   :  { %v393_v59 = vmul.f32 %v1264_v37, %v1264_v37  ;;  %v394_v2 = vmul.f32 %v1267_v43, %v1267_v43 }
 0x184   :  { %v1276_v60 = vsub.f32 %v1155_v54, %v346_v45  ;;  %v1279_v49 = vsub.f32 %v1157_v55, %v346_v45  ;;  %v422_v51 = vadd.f32 %v421_v53, %v390_v25  ;;  %v425_v0 = vadd.f32 %v392_v48, %v391_v47 }
 0x185   :  { %v326_v34 = vpop.xlane.xlu0 %325  ;;  %v1284_v4 = vsub.f32 %v1159_v56, %v346_v45  ;;  %v1287_v8 = vsub.f32 %v1163_v58, %v346_v45 }
 0x186   :  { %v347_v11 = vmul.f32 0.001953125, %v326_v34  ;;  %423 = vadd.xlane.f32.xlu1 %v422_v51  ;;  %v426_v15 = vadd.f32 %v425_v0, %v393_v59  ;;  %v395_v54 = vmul.f32 %v1276_v60, %v1276_v60  ;;  %v396_v55 = vmul.f32 %v1279_v49, %v1279_v49 }
 0x187   :  { %v397_v40 = vmul.f32 %v1284_v4, %v1284_v4  ;;  %v398_v44 = vmul.f32 %v1287_v8, %v1287_v8 }
 0x188   :  { %v1296_v41 = vsub.f32 %v1167_v61, %v347_v11  ;;  %v1299_v56 = vsub.f32 %v1169_v62, %v347_v11  ;;  %v427_v58 = vadd.f32 %v426_v15, %v394_v2  ;;  %v430_v17 = vadd.f32 %v396_v55, %v395_v54 }
 0x189   :  { %v331_v22 = vpop.xlane.xlu1 %330  ;;  %v1304_v24 = vsub.f32 %v1171_v63, %v347_v11  ;;  %v1307_v25 = vsub.f32 %v1175_v1, %v347_v11 }
 0x18a   :  { %v348_v45 = vmul.f32 0.001953125, %v331_v22  ;;  %428 = vadd.xlane.f32.xlu0 %v427_v58  ;;  %v431_v53 = vadd.f32 %v430_v17, %v397_v40  ;;  %v399_v61 = vmul.f32 %v1296_v41, %v1296_v41  ;;  %v400_v62 = vmul.f32 %v1299_v56, %v1299_v56 }
 0x18b   :  { %v401_v47 = vmul.f32 %v1304_v24, %v1304_v24  ;;  %v402_v0 = vmul.f32 %v1307_v25, %v1307_v25 }
 0x18c   :  { %v1316_v48 = vsub.f32 %v1179_v5, %v348_v45  ;;  %v1319_v63 = vsub.f32 %v1181_v6, %v348_v45  ;;  %v432_v1 = vadd.f32 %v431_v53, %v398_v44  ;;  %v435_v59 = vadd.f32 %v400_v62, %v399_v61 }
 0x18d   :  { %v336_v51 = vpop.xlane.xlu0 %335  ;;  %v1324_v34 = vsub.f32 %v1183_v7, %v348_v45  ;;  %v1327_v2 = vsub.f32 %v1187_v9, %v348_v45 }
 0x18e   :  { %v349_v11 = vmul.f32 0.001953125, %v336_v51  ;;  %433 = vadd.xlane.f32.xlu1 %v432_v1  ;;  %v436_v15 = vadd.f32 %v435_v59, %v401_v47  ;;  %v403_v5 = vmul.f32 %v1316_v48, %v1316_v48  ;;  %v404_v6 = vmul.f32 %v1319_v63, %v1319_v63 }
 0x18f   :  { %v405_v54 = vmul.f32 %v1324_v34, %v1324_v34  ;;  %v406_v17 = vmul.f32 %v1327_v2, %v1327_v2 }
 0x190   :  { %v1336_v55 = vsub.f32 %v1191_v12, %v349_v11  ;;  %v1339_v7 = vsub.f32 %v1193_v13, %v349_v11  ;;  %v437_v9 = vadd.f32 %v436_v15, %v402_v0  ;;  %v440_v40 = vadd.f32 %v404_v6, %v403_v5 }
 0x191   :  { %v341_v58 = vpop.xlane.xlu1 %340  ;;  %v1344_v22 = vsub.f32 %v1195_v14, %v349_v11  ;;  %v1347_v44 = vsub.f32 %v1199_v16, %v349_v11 }
 0x192   :  { %v350_v45 = vmul.f32 0.001953125, %v341_v58  ;;  %438 = vadd.xlane.f32.xlu0 %v437_v9  ;;  %v441_v53 = vadd.f32 %v440_v40, %v405_v54  ;;  %v407_v12 = vmul.f32 %v1336_v55, %v1336_v55  ;;  %v408_v13 = vmul.f32 %v1339_v7, %v1339_v7 }
 0x193   :  { %v409_v61 = vmul.f32 %v1344_v22, %v1344_v22  ;;  %v410_v1 = vmul.f32 %v1347_v44, %v1347_v44 }
 0x194   :  { %v1356_v62 = vsub.f32 %v1203_v19, %v350_v45  ;;  %v1359_v14 = vsub.f32 %v1205_v20, %v350_v45  ;;  %v442_v16 = vadd.f32 %v441_v53, %v406_v17  ;;  %v445_v47 = vadd.f32 %v408_v13, %v407_v12 }
 0x195   :  { %v1364_v59 = vsub.f32 %v1207_v21, %v350_v45  ;;  %v1367_v0 = vsub.f32 %v1211_v23, %v350_v45  ;;  %v947_v23 = vmov 27  }
 0x196   :  { %443 = vadd.xlane.f32.xlu1 %v442_v16  ;;  %v446_v51 = vadd.f32 %v445_v47, %v409_v61  ;;  %v411_v19 = vmul.f32 %v1356_v62, %v1356_v62  ;;  %v412_v20 = vmul.f32 %v1359_v14, %v1359_v14  ;;  %920 = vset.pattern.permute.xlu0 %v947_v23 }
 0x197   :  { %v413_v15 = vmul.f32 %v1364_v59, %v1364_v59  ;;  %v414_v21 = vmul.f32 %v1367_v0, %v1367_v0 }
 0x198   :  { %v447_v11 = vadd.f32 %v446_v51, %v410_v1  ;;  %v450_v5 = vadd.f32 %v412_v20, %v411_v19 }
 0x19a   :  { %448 = vadd.xlane.f32.xlu0 %v447_v11  ;;  %v451_v6 = vadd.f32 %v450_v5, %v413_v15 }
 0x19c   :  { %v452_v54 = vadd.f32 %v451_v6, %v414_v21 }
 0x19e   :  { %453 = vadd.xlane.f32.xlu1 %v452_v54 }
 0x1af   :  { %560 = vperm.xlu1 %919, %v1033_v26  }
 0x1b3   :  { %564 = vperm.xlu1 %919, %v1045_v27  }
 0x1b7   :  { %568 = vperm.xlu1 %919, %v1056_v28  }
 0x1bb   :  { %572 = vperm.xlu1 %919, %v1067_v29  }
 0x1bf   :  { %576 = vperm.xlu1 %919, %v1078_v30  }
 0x1c3   :  { %922 = vset.pattern.permute.xlu1 %v947_v23 }
 0x20f   :  { %v419_v9 = vpop.xlane.xlu0 %418 }
 0x210   :  { %v455_v40 = vmul.f32 0.001953125, %v419_v9 }
 0x212   :  { %v463_v58 = vadd.f32 1e-05, %v455_v40 }
 0x213   :  { %v424_v17 = vpop.xlane.xlu1 %423 }
 0x214   :  { %928 = vrsqrt.f32 %v463_v58  ;;  %v456_v45 = vmul.f32 0.001953125, %v424_v17 }
 0x216   :  { %v464_v53 = vadd.f32 1e-05, %v456_v45 }
 0x217   :  { %v429_v12 = vpop.xlane.xlu0 %428 }
 0x218   :  { %930 = vrsqrt.f32 %v464_v53  ;;  %v457_v13 = vmul.f32 0.001953125, %v429_v12 }
 0x21a   :  { %v465_v61 = vadd.f32 1e-05, %v457_v13 }
 0x21b   :  { %v434_v16 = vpop.xlane.xlu1 %433 }
 0x21c   :  { %932 = vrsqrt.f32 %v465_v61  ;;  %v458_v47 = vmul.f32 0.001953125, %v434_v16 }
 0x21e   :  { %v929_v1 = vpop.eup %928  ;;  %v466_v51 = vadd.f32 1e-05, %v458_v47 }
 0x21f   :  { %v439_v19 = vpop.xlane.xlu0 %438  ;;  %v479_v20 = vmul.f32 %v929_v1, %v1033_v26 }
 0x220   :  { %934 = vrsqrt.f32 %v466_v51  ;;  %v459_v11 = vmul.f32 0.001953125, %v439_v19 }
 0x221   :  { %489 = vperm.xlu0 %920, %v479_v20   ;;  %v948_v20 = vmov 64  }
 0x222   :  { %v931_v15 = vpop.eup %930  ;;  %v467_v5 = vadd.f32 1e-05, %v459_v11 }
 0x223   :  { %v444_v21 = vpop.xlane.xlu1 %443  ;;  %v480_v6 = vmul.f32 %v931_v15, %v1045_v27 }
 0x224   :  { %936 = vrsqrt.f32 %v467_v5  ;;  %v460_v54 = vmul.f32 0.001953125, %v444_v21 }
 0x225   :  { %494 = vperm.xlu1 %922, %v480_v6   ;;  %921 = vset.pattern.permute.xlu0 %v946_v39 }
 0x226   :  { %v933_v9 = vpop.eup %932  ;;  %v468_v40 = vadd.f32 1e-05, %v460_v54  ;;  %580 = vperm.xlu0 %921, %v1089_v31  }
 0x227   :  { %v449_v58 = vpop.xlane.xlu0 %448  ;;  %v481_v26 = vmul.f32 %v933_v9, %v1056_v28 }
 0x228   :  { %938 = vrsqrt.f32 %v468_v40  ;;  %v461_v17 = vmul.f32 0.001953125, %v449_v58 }
 0x229   :  { %499 = vperm.xlu1 %922, %v481_v26  }
 0x22a   :  { %v935_v45 = vpop.eup %934  ;;  %v469_v53 = vadd.f32 1e-05, %v461_v17  ;;  %923 = vset.pattern.permute.xlu0 %v947_v23 }
 0x22b   :  { %v454_v12 = vpop.xlane.xlu1 %453  ;;  %v482_v27 = vmul.f32 %v935_v45, %v1067_v29 }
 0x22c   :  { %940 = vrsqrt.f32 %v469_v53  ;;  %v462_v13 = vmul.f32 0.001953125, %v454_v12 }
 0x22d   :  { %504 = vperm.xlu1 %922, %v482_v27  }
 0x22e   :  { %v937_v61 = vpop.eup %936  ;;  %v470_v16 = vadd.f32 1e-05, %v462_v13 }
 0x22f   :  { %v483_v47 = vmul.f32 %v937_v61, %v1078_v30  ;;  %v1399_v30 = vld [vmem:[%s1478_s2] sm:$0xff] }
 0x230   :  { %942 = vrsqrt.f32 %v470_v16 }
 0x231   :  { %509 = vperm.xlu1 %922, %v483_v47  }
 0x232   :  { %v939_v1 = vpop.eup %938 }
 0x233   :  { %v484_v28 = vmul.f32 %v939_v1, %v1089_v31  ;;  %v1404_v31 = vld [vmem:[%s1478_s2 + $0x8] sm:$0x1] }
 0x235   :  { %514 = vperm.xlu0 %923, %v484_v28  }
 0x236   :  { %v941_v51 = vpop.eup %940 }
 0x237   :  { %v485_v19 = vmul.f32 %v941_v51, %v1100_v32 }
 0x239   :  { %519 = vperm.xlu1 %922, %v485_v19   ;;  %924 = vset.pattern.permute.xlu0 %v946_v39 }
 0x23a   :  { %v943_v29 = vpop.eup %942  ;;  %584 = vperm.xlu0 %924, %v1100_v32   ;;  %v561_v32 = vpop.permute.xlu1 %560 }
 0x23b   :  { %v486_v23 = vmul.f32 %v943_v29, %v1111_v33 }
 0x23d   :  { %524 = vperm.xlu1 %922, %v486_v23  }
 0x23e   :  { %926 = vset.pattern.permute.xlu0 %v948_v20 }
 0x23f   :  { %659 = vperm.xlu0 %926, %v1399_v30  }
 0x241   :  { %925 = vset.pattern.permute.xlu1 %v946_v39  ;;  %v565_v39 = vpop.permute.xlu1 %564 }
 0x242   :  { %588 = vperm.xlu1 %925, %v1111_v33  }
 0x245   :  { %v569_v33 = vpop.permute.xlu1 %568 }
 0x246   :  { %927 = vset.pattern.permute.xlu1 %v948_v20 }
 0x247   :  { %664 = vperm.xlu1 %927, %v1404_v31  }
 0x249   :  { %v573_v11 = vpop.permute.xlu1 %572 }
 0x24d   :  { %v1408_v15 = vpop.permute.xlu1 %576 }
 0x2a0   :  { %v490_v5 = vpop.permute.xlu0 %489 }
 0x2a1   :  { %v527_v21 = vmul.f32 %v490_v5, %v1218_v46  ;;  %v528_v6 = vmul.f32 %v490_v5, %v1221_v50  ;;  %v529_v54 = vmul.f32 %v490_v5, %v1224_v52  ;;  %v530_v9 = vmul.f32 %v490_v5, %v1227_v57 }
 0x2a3   :  { %v591_v40 = vadd.f32 %v561_v32, %v527_v21  ;;  %v593_v58 = vadd.f32 %v561_v32, %v529_v54  ;;  %v592_v17 = vadd.f32 %v561_v32, %v528_v6  ;;  %v594_v45 = vadd.f32 %v561_v32, %v530_v9 }
 0x2a4   :  { %v495_v26 = vpop.permute.xlu1 %494 }
 0x2a5   :  { %v531_v53 = vmul.f32 %v495_v26, %v1236_v35  ;;  %v532_v12 = vmul.f32 %v495_v26, %v1239_v36  ;;  %v533_v27 = vmul.f32 %v495_v26, %v1242_v38  ;;  %v534_v13 = vmul.f32 %v495_v26, %v1247_v10 }
 0x2a6   :  { %v623_v46 = vmax.f32 %v591_v40, 0.0  ;;  %v625_v61 = vmax.f32 %v593_v58, 0.0  ;;  %v624_v57 = vmax.f32 %v592_v17, 0.0  ;;  %v626_v28 = vmax.f32 %v594_v45, 0.0 }
 0x2a7   :  { %v595_v50 = vadd.f32 %v565_v39, %v531_v53  ;;  %v596_v16 = vadd.f32 %v565_v39, %v532_v12  ;;  %v597_v52 = vadd.f32 %v565_v39, %v533_v27  ;;  %v598_v1 = vadd.f32 %v565_v39, %v534_v13 }
 0x2a8   :  { %v500_v47 = vpop.permute.xlu1 %499 }
 0x2a9   :  { %v627_v51 = vmax.f32 %v595_v50, 0.0  ;;  %v535_v19 = vmul.f32 %v500_v47, %v1256_v42  ;;  %v536_v35 = vmul.f32 %v500_v47, %v1259_v18  ;;  %v537_v36 = vmul.f32 %v500_v47, %v1264_v37 }
 0x2aa   :  { %v629_v29 = vmax.f32 %v597_v52, 0.0  ;;  %v538_v38 = vmul.f32 %v500_v47, %v1267_v43  ;;  %v628_v10 = vmax.f32 %v596_v16, 0.0  ;;  %v630_v23 = vmax.f32 %v598_v1, 0.0  ;;  %v581_v43 = vpop.permute.xlu0 %580 }
 0x2ab   :  { %v599_v20 = vadd.f32 %v569_v33, %v535_v19  ;;  %v601_v32 = vadd.f32 %v569_v33, %v537_v36  ;;  %v884_v5 = vpack.c.bf16 %v627_v51, %v623_v46  ;;  %v600_v21 = vadd.f32 %v569_v33, %v536_v35 }
 0x2ac   :  { %v505_v6 = vpop.permute.xlu1 %504  ;;  %v882_v54 = vpack.c.bf16 %v628_v10, %v624_v57  ;;  %v898_v39 = vpack.c.bf16 %v630_v23, %v626_v28  ;;  %v900_v9 = vpack.c.bf16 %v629_v29, %v625_v61  ;;  %v602_v40 = vadd.f32 %v569_v33, %v538_v38 }
 0x2ad   :  { %v539_v42 = vmul.f32 %v505_v6, %v1276_v60  ;;  %v540_v18 = vmul.f32 %v505_v6, %v1279_v49  ;;  %v541_v37 = vmul.f32 %v505_v6, %v1284_v4  ;;  %v542_v58 = vmul.f32 %v505_v6, %v1287_v8 }
 0x2ae   :  { %883 = vmatprep.subr.bf16.mxu0 %v882_v54  ;;  %899 = vmatprep.subr.bf16.mxu1 %v898_v39  ;;  %v631_v26 = vmax.f32 %v599_v20, 0.0  ;;  %v633_v17 = vmax.f32 %v601_v32, 0.0  ;;  %v632_v33 = vmax.f32 %v600_v21, 0.0  ;;  %v634_v60 = vmax.f32 %v602_v40, 0.0 }
 0x2af   :  { %v603_v45 = vadd.f32 %v573_v11, %v539_v42  ;;  %885 = vmatpush1.bf16.msra.mxu0 %v884_v5  ;;  %901 = vmatpush1.bf16.msra.mxu1 %v900_v9  ;;  %v604_v53 = vadd.f32 %v573_v11, %v540_v18  ;;  %v605_v12 = vadd.f32 %v573_v11, %v541_v37 }
 0x2b0   :  { %v510_v27 = vpop.permute.xlu1 %509  ;;  %v606_v13 = vadd.f32 %v573_v11, %v542_v58 }
 0x2b1   :  { %v635_v46 = vmax.f32 %v603_v45, 0.0  ;;  %v543_v49 = vmul.f32 %v510_v27, %v1296_v41  ;;  %v544_v4 = vmul.f32 %v510_v27, %v1299_v56  ;;  %v545_v8 = vmul.f32 %v510_v27, %v1304_v24 }
 0x2b2   :  { %v637_v61 = vmax.f32 %v605_v12, 0.0  ;;  %v546_v50 = vmul.f32 %v510_v27, %v1307_v25  ;;  %v636_v16 = vmax.f32 %v604_v53, 0.0  ;;  %v638_v52 = vmax.f32 %v606_v13, 0.0 }
 0x2b3   :  { %v607_v47 = vadd.f32 %v1408_v15, %v543_v49  ;;  %v888_v57 = vpack.c.bf16 %v635_v46, %v631_v26  ;;  %v609_v1 = vadd.f32 %v1408_v15, %v545_v8  ;;  %v608_v24 = vadd.f32 %v1408_v15, %v544_v4 }
 0x2b4   :  { %v515_v28 = vpop.permute.xlu0 %514  ;;  %v886_v11 = vpack.c.bf16 %v636_v16, %v632_v33  ;;  %v902_v51 = vpack.c.bf16 %v638_v52, %v634_v60  ;;  %v904_v19 = vpack.c.bf16 %v637_v61, %v633_v17  ;;  %v610_v35 = vadd.f32 %v1408_v15, %v546_v50 }
 0x2b5   :  { %v547_v41 = vmul.f32 %v515_v28, %v1316_v48  ;;  %v548_v56 = vmul.f32 %v515_v28, %v1319_v63  ;;  %v549_v25 = vmul.f32 %v515_v28, %v1324_v34  ;;  %v550_v36 = vmul.f32 %v515_v28, %v1327_v2 }
 0x2b6   :  { %887 = vmatprep.subr.bf16.mxu0 %v886_v11  ;;  %903 = vmatprep.subr.bf16.mxu1 %v902_v51  ;;  %v639_v10 = vmax.f32 %v607_v47, 0.0  ;;  %v641_v32 = vmax.f32 %v609_v1, 0.0  ;;  %v640_v5 = vmax.f32 %v608_v24, 0.0  ;;  %v642_v21 = vmax.f32 %v610_v35, 0.0 }
 0x2b7   :  { %v611_v29 = vadd.f32 %v581_v43, %v547_v41  ;;  %889 = vmatpush1.bf16.msra.mxu0 %v888_v57  ;;  %905 = vmatpush1.bf16.msra.mxu1 %v904_v19  ;;  %v612_v38 = vadd.f32 %v581_v43, %v548_v56  ;;  %v613_v23 = vadd.f32 %v581_v43, %v549_v25 }
 0x2b8   :  { %v520_v20 = vpop.permute.xlu1 %519  ;;  %v614_v48 = vadd.f32 %v581_v43, %v550_v36 }
 0x2b9   :  { %v643_v63 = vmax.f32 %v611_v29, 0.0  ;;  %v645_v6 = vmax.f32 %v613_v23, 0.0  ;;  %v551_v15 = vmul.f32 %v520_v20, %v1336_v55  ;;  %v644_v34 = vmax.f32 %v612_v38, 0.0  ;;  %v585_v40 = vpop.permute.xlu0 %584 }
 0x2ba   :  { %v646_v54 = vmax.f32 %v614_v48, 0.0  ;;  %v552_v2 = vmul.f32 %v520_v20, %v1339_v7  ;;  %v553_v39 = vmul.f32 %v520_v20, %v1344_v22  ;;  %v554_v9 = vmul.f32 %v520_v20, %v1347_v44 }
 0x2bb   :  { %v892_v42 = vpack.c.bf16 %v643_v63, %v639_v10  ;;  %v890_v37 = vpack.c.bf16 %v644_v34, %v640_v5  ;;  %v908_v43 = vpack.c.bf16 %v645_v6, %v641_v32  ;;  %v615_v26 = vadd.f32 %v585_v40, %v551_v15 }
 0x2bc   :  { %v525_v18 = vpop.permute.xlu1 %524  ;;  %v906_v58 = vpack.c.bf16 %v646_v54, %v642_v21  ;;  %v616_v17 = vadd.f32 %v585_v40, %v552_v2  ;;  %v617_v45 = vadd.f32 %v585_v40, %v553_v39  ;;  %v618_v55 = vadd.f32 %v585_v40, %v554_v9 }
 0x2bd   :  { %891 = vmatprep.subr.bf16.mxu0 %v890_v37  ;;  %v555_v7 = vmul.f32 %v525_v18, %v1356_v62  ;;  %v556_v22 = vmul.f32 %v525_v18, %v1359_v14  ;;  %v557_v44 = vmul.f32 %v525_v18, %v1364_v59  ;;  %v558_v53 = vmul.f32 %v525_v18, %v1367_v0 }
 0x2be   :  { %907 = vmatprep.subr.bf16.mxu1 %v906_v58  ;;  %893 = vmatpush1.bf16.msra.mxu0 %v892_v42  ;;  %v647_v46 = vmax.f32 %v615_v26, 0.0  ;;  %v649_v49 = vmax.f32 %v617_v45, 0.0  ;;  %v648_v4 = vmax.f32 %v616_v17, 0.0  ;;  %v650_v8 = vmax.f32 %v618_v55, 0.0  ;;  %v660_v59 = vpop.permute.xlu0 %659 }
 0x2bf   :  { %909 = vmatpush1.bf16.msra.mxu1 %v908_v43 }
 0x2c1   :  { %v589_v12 = vpop.permute.xlu1 %588 }
 0x2c2   :  { %v619_v27 = vadd.f32 %v589_v12, %v555_v7  ;;  %v620_v33 = vadd.f32 %v589_v12, %v556_v22  ;;  %v621_v13 = vadd.f32 %v589_v12, %v557_v44  ;;  %v622_v60 = vadd.f32 %v589_v12, %v558_v53 }
 0x2c4   :  { %v651_v61 = vmax.f32 %v619_v27, 0.0  ;;  %v653_v50 = vmax.f32 %v621_v13, 0.0  ;;  %v652_v16 = vmax.f32 %v620_v33, 0.0  ;;  %v654_v52 = vmax.f32 %v622_v60, 0.0 }
 0x2c6   :  { %v894_v62 = vpack.c.bf16 %v652_v16, %v648_v4  ;;  %v910_v47 = vpack.c.bf16 %v654_v52, %v650_v8  ;;  %v896_v14 = vpack.c.bf16 %v651_v61, %v647_v46  ;;  %v912_v57 = vpack.c.bf16 %v653_v50, %v649_v49  ;;  %v665_v24 = vpop.permute.xlu1 %664 }
 0x2c8   :  { %895 = vmatprep.subr.bf16.mxu0 %v894_v62  ;;  %911 = vmatprep.subr.bf16.mxu1 %v910_v47 }
 0x2c9   :  { %897 = vmatpush1.bf16.msra.mxu0 %v896_v14  ;;  %913 = vmatpush1.bf16.msra.mxu1 %v912_v57 }
 0x2cc   :  { %858 = vmatmul.mubr.msk.f32.vlgmr.msra.gmra.mrb[16].mxu0 %vm667_vm4, %v1399_v30  ;;  %860 = vmatmul.mubr.msk.f32.vlgmr.msra.gmra.mrb[16].mxu1 %vm667_vm4, %v1399_v30 }
 0x2cd   :  { %742 = vmatprep.mubr.f32.mxu0 %v944_v3  ;;  %819 = vmatprep.mubr.f32.mxu1 %v944_v3 }
 0x2d0   :  { %859 = vmatmul.mubr.msk.f32.gmra.mrb[18].mxu0 %vm667_vm4, %v1404_v31  ;;  %861 = vmatmul.mubr.msk.f32.gmra.mrb[18].mxu1 %vm667_vm4, %v1404_v31 }
 0x39f   :  { %v738_v0 = vpop.f32.mrb[16].mxu0  ;;  %v815_v1 = vpop.f32.mrb[16].mxu1 }
 0x3a0   :  { %v739_v28 = vadd.f32 %v738_v0, %v660_v59  ;;  %v816_v11 = vadd.f32 %v815_v1, %v660_v59  ;;  %v740_v51 = vpop.f32.mrb[17].mxu0  ;;  %v817_v19 = vpop.f32.mrb[17].mxu1 }
 0x3a1   :  { %v741_v41 = vadd.f32 %v740_v51, %v660_v59  ;;  %v818_v56 = vadd.f32 %v817_v19, %v660_v59 }
 0x3a2   :  { %826 = vst [vmem:[%s1479_s3] sm:$0xff] %v739_v28  ;;  %828 = vst [vmem:[%s1479_s3 + $0x10] sm:$0xff] %v816_v11 }
 0x3a3   :  { %827 = vst [vmem:[%s1479_s3 + $0x8] sm:$0xff] %v741_v41  ;;  %829 = vst [vmem:[%s1479_s3 + $0x18] sm:$0xff] %v818_v56  ;;  %v744_v3 = vpop.f32.mrb[18].mxu0  ;;  %v821_v30 = vpop.f32.mrb[18].mxu1 }
 0x3a4   :  { %v746_v31 = vpop.f32.mrb[19].mxu0  ;;  %v823_v35 = vpop.f32.mrb[19].mxu1  ;;  %v745_v25 = vadd.f32 %v744_v3, %v665_v24  ;;  %v822_v36 = vadd.f32 %v821_v30, %v665_v24 }
 0x3a5   :  { %v747_v29 = vadd.f32 %v746_v31, %v665_v24  ;;  %v824_v38 = vadd.f32 %v823_v35, %v665_v24 }
 0x3a6   :  { %830 = vst [vmem:[%s1479_s3 + $0x20] sm:$0x1] %v745_v25  ;;  %832 = vst [vmem:[%s1479_s3 + $0x30] sm:$0x1] %v822_v36 }
 0x3a7   :  { %831 = vst [vmem:[%s1479_s3 + $0x28] sm:$0x1] %v747_v29  ;;  %833 = vst [vmem:[%s1479_s3 + $0x38] sm:$0x1] %v824_v38 }

</bundles_post_ra>
